<compile_context>
chip_gen: v5e
topology: v5e:2x2
jax: 0.10.0
libtpu: 0.0.40
codegen_flags: <defaults>
</compile_context>

<pallas_src>
import jax
import jax.numpy as jnp
from jax import lax
from jax.experimental import pallas as pl
from jax.experimental.pallas import tpu as pltpu

TOLERANCE = 1e-4
TOL_SQ = TOLERANCE * TOLERANCE
MAX_ITERATIONS = 50
PEELED = 2          # z starts at 0: iteration 1 is tanh(x0); iteration 2 also peeled
CHECK_EVERY = 24    # 2 peeled + 2 * 24 == 50 == max_iterations (cap is exact)
assert (MAX_ITERATIONS - PEELED) % CHECK_EVERY == 0


def critic_kernel(ut_ref, w1_ref, b1t_ref, wf_ref, wot_ref, bo_ref, out_ref):
    # Batch-on-lanes layout: every activation is (D, TB) with TB on the lanes.
    #   ut_ref : (D, TB)   u^T = [x ; a]^T
    #   w1_ref : (D, D)    PyTorch-orientation (out, in) weight of the input linear
    #   b1t_ref: (D, 1)
    #   wf_ref : (D, D)    bias-free fixed-point weight (PyTorch orientation)
    #   wot_ref: (D, 1)    output-head weight as a column vector
    #   bo_ref : (1, 1)    scalar bias in SMEM
    #   out_ref: (1, TB)   lane-dense output row
    ut = ut_ref[...]
    wf = wf_ref[...]            # loop-invariant: loaded once, closed over

    # Transformers.linear + tanh:  x0^T = tanh(W1 @ u^T + b1^T)
    x0 = jnp.tanh(
        jnp.dot(w1_ref[...], ut, preferred_element_type=jnp.float32) + b1t_ref[...]
    )

    # FixedPointLayer.  z starts at 0, so iteration 1 is just tanh(x0);
    # iteration 2 is peeled as well so the first convergence check (a cross-lane
    # XLU reduce + vreg->sreg handoff that drains the pipeline) happens at it==2.
    z1 = jnp.tanh(x0)
    z2 = jnp.tanh(jnp.dot(wf, z1, preferred_element_type=jnp.float32) + x0)
    d0 = z2 - z1
    err_sq0 = jnp.sum(d0 * d0)

    def step(z):
        # z_next^T = tanh(Wf @ z^T + x0^T)   -- (D,D)@(D,TB): batch on the MXU N-dim
        # TODO(synk): at D=16 a pure-VPU formulation (16 broadcast-FMAs/step) may
        # beat the MXU round-trip; benchmark per generation.
        return jnp.tanh(jnp.dot(wf, z, preferred_element_type=jnp.float32) + x0)

    def cond_fn(carry):
        _, err_sq, it = carry
        # squared-norm test: identical decision to ||.||_F < tol, no sqrt on the
        # serial path
        return jnp.logical_and(it < MAX_ITERATIONS, err_sq >= TOL_SQ)

    def body_fn(carry):
        z, _, it = carry
        # CHECK_EVERY unrolled contraction steps; the XLU reduce and the scalar
        # branch are amortized over the whole block (2 sync points total).
        for _ in range(CHECK_EVERY - 1):
            z = step(z)
        z_next = step(z)
        diff = z - z_next
        return z_next, jnp.sum(diff * diff), it + CHECK_EVERY

    z, _, _ = lax.while_loop(cond_fn, body_fn, (z2, err_sq0, jnp.int32(PEELED)))

    # Critic.output head (D -> 1): VPU broadcast-multiply + sublane reduce gives
    # a lane-dense (1, TB) row (no M=1 MXU push, no masked width-1 store).
    out_ref[...] = (
        jnp.sum(z * wot_ref[...], axis=0, keepdims=True) + bo_ref[0, 0]
    )


def critic_forward(x, a, params, *, block_b=None):
    """x: (B, S), a: (B, A). Returns (B, 1), float32."""
    x = x.astype(jnp.float32)
    a = a.astype(jnp.float32)
    B, S = x.shape
    A = a.shape[1]
    w1, b1t, wf, wot, bo = params
    D = wf.shape[0]
    assert D == S + A

    # Layout plumbing only: stack x^T / a^T along sublanes so the kernel does a
    # single W1 @ u^T push and every activation is lane-dense in the batch dim.
    ut = jnp.concatenate([x.T, a.T], axis=0)        # (D, B)

    # ---- block sizing -------------------------------------------------------
    # Batch lives on the lanes ⇒ a partial block must be a multiple of 128.
    # Sized against a ~24 MiB budget so it also fits v7x's 32 MiB default-scoped
    # / 64 MiB physical VMEM (and v5e's 16 MiB default scoped via the explicit
    # vmem_limit below).
    weight_bytes = 4 * (2 * D * D + 3 * D)          # W1, Wf, b1^T, Wo^T (+bo)
    per_col_bytes = 4 * D * 10                      # u, x0, z, temps, 2x-buffered I/O
    budget = 24 << 20
    if block_b is None:
        if B >= 256 and B % 128 == 0:
            # >=2 lane-aligned grid blocks so ("parallel",) shards across both
            # v7x TensorCores.
            block_b = max(128, (B // 2) // 128 * 128)
            cap = max(128, (budget - weight_bytes) // per_col_bytes // 128 * 128)
            while block_b > 128 and (block_b > cap or B % block_b != 0):
                block_b -= 128
        else:
            block_b = B
    num_blocks = B // block_b
    assert B % block_b == 0
    if num_blocks > 1:
        # NOTE: with >1 block the Frobenius stopping criterion becomes per-block
        # (the reference couples the whole batch through one norm); deviation
        # stays O(tolerance).
        assert block_b % 128 == 0

    # Loop-invariant weights never get re-DMA'd (constant index map); single-
    # buffer them when the grid is actually pipelined so Wf at large D does not
    # double its VMEM footprint.
    if num_blocks > 1:
        def weight_spec(shape):
            return pl.BlockSpec(shape, lambda i: (0, 0),
                                pipeline_mode=pl.Buffered(1))
    else:
        def weight_spec(shape):
            return pl.BlockSpec(shape, lambda i: (0, 0))

    # Explicit VMEM limit (don't rely on per-generation defaults); everything is
    # kept in f32 (v5e has no bf16 VPU/EUP).
    est_bytes = 2 * weight_bytes + per_col_bytes * block_b
    vmem_limit = int(min(32 << 20, max(2 * est_bytes, 16 << 20)))

    out_row = pl.pallas_call(
        critic_kernel,
        out_shape=jax.ShapeDtypeStruct((1, B), jnp.float32),
        grid=(num_blocks,),
        in_specs=[
            pl.BlockSpec((D, block_b), lambda i: (0, i)),       # u^T (batch on lanes)
            weight_spec((D, D)),                                # W1
            weight_spec((D, 1)),                                # b1^T
            weight_spec((D, D)),                                # Wf
            weight_spec((D, 1)),                                # Wo^T
            pl.BlockSpec(memory_space=pltpu.MemorySpace.SMEM),  # bo scalar
        ],
        out_specs=pl.BlockSpec((1, block_b), lambda i: (0, i)),  # lane-dense row
        compiler_params=pltpu.CompilerParams(
            dimension_semantics=("parallel",),
            vmem_limit_bytes=vmem_limit),
    )(ut, w1, b1t, wf, wot, bo)

    return out_row.reshape(B, 1)


def critic_reference(x, a, params):
    """Pure-JAX reference with the exact per-iteration stopping rule."""
    w1, b1t, wf, wot, bo = params
    u = jnp.concatenate([x, a], axis=1).astype(jnp.float32)
    x0 = jnp.tanh(u @ w1.T + b1t.T)

    def cond_fn(c):
        _, err, it = c
        return jnp.logical_and(it < MAX_ITERATIONS, err >= TOLERANCE)

    def body_fn(c):
        z, _, it = c
        z_next = jnp.tanh(z @ wf.T + x0)
        return z_next, jnp.linalg.norm(z - z_next), it + 1

    z0 = jnp.zeros_like(x0)
    z, _, _ = lax.while_loop(
        cond_fn, body_fn, (z0, jnp.float32(jnp.inf), jnp.int32(0)))
    return z @ wot + bo


def init_params(key, state_space, action_space):
    """Deterministic init mimicking PyTorch's default Linear init scale."""
    d = state_space + action_space
    k1, k2, k3, k4, k5 = jax.random.split(key, 5)
    bound = 1.0 / jnp.sqrt(jnp.float32(d))
    # Stored in PyTorch (out, in) orientation; the kernel works on transposed
    # (batch-on-lanes) activations so no weight transpose is needed at all.
    w1 = jax.random.uniform(k1, (d, d), jnp.float32, -bound, bound)   # input linear
    b1t = jax.random.uniform(k2, (d, 1), jnp.float32, -bound, bound)  # its bias (col)
    wf = jax.random.uniform(k3, (d, d), jnp.float32, -bound, bound)   # fixed-point, bias-free
    wot = jax.random.uniform(k4, (d, 1), jnp.float32, -bound, bound)  # output W^T (col)
    bo = jax.random.uniform(k5, (1, 1), jnp.float32, -bound, bound)   # output bias
    return (w1, b1t, wf, wot, bo)


if __name__ == "__main__":
    state_space = 12
    action_space = 4
    batch = 8

    key = jax.random.PRNGKey(0)
    kx, ka, kp = jax.random.split(key, 3)
    x = jax.random.normal(kx, (batch, state_space), jnp.float32)
    a = jax.random.normal(ka, (batch, action_space), jnp.float32)
    params = init_params(kp, state_space, action_space)

    out = critic_forward(x, a, params)
    jax.block_until_ready(out)
    assert out.shape == (batch, 1), out.shape

    # Sanity-check against the exact per-iteration-stop reference; the blocked
    # convergence check can run extra contraction steps past the reference's
    # stopping point, so deviation is bounded by O(tolerance).
    ref = critic_reference(x, a, params)
    max_err = float(jnp.max(jnp.abs(out - ref)))
    assert max_err < 1e-2, f"kernel/reference mismatch: {max_err}"

    print("KERNEL_OK")
</pallas_src>

<mosaic_0001>
module attributes {stable_mosaic.version = 11 : i64} {
  func.func @critic_kernel(%arg0: i32, %arg1: memref<16x8xf32, #tpu.memory_space<vmem>>, %arg2: memref<16x16xf32, #tpu.memory_space<vmem>>, %arg3: memref<16x1xf32, #tpu.memory_space<vmem>>, %arg4: memref<16x16xf32, #tpu.memory_space<vmem>>, %arg5: memref<16x1xf32, #tpu.memory_space<vmem>>, %arg6: memref<1x1xf32, #tpu.memory_space<smem>>, %arg7: memref<1x8xf32, #tpu.memory_space<vmem>>) attributes {dimension_semantics = [#tpu.dimension_semantics<parallel>], iteration_bounds = array<i64: 1>, scalar_prefetch = 0 : i64, scratch_operands = 0 : i64, tpu.core_type = #tpu.core_type<tc>, window_params = [{transform_indices = @transform_0, window_bounds = array<i64: 16, 8>}, {pipeline_mode = #tpu.pipeline_mode<synchronous>, transform_indices = @transform_1, window_bounds = array<i64: 16, 16>}, {pipeline_mode = #tpu.pipeline_mode<synchronous>, transform_indices = @transform_2, window_bounds = array<i64: 16, 1>}, {pipeline_mode = #tpu.pipeline_mode<synchronous>, transform_indices = @transform_3, window_bounds = array<i64: 16, 16>}, {pipeline_mode = #tpu.pipeline_mode<synchronous>, transform_indices = @transform_4, window_bounds = array<i64: 16, 1>}, {transform_indices = @transform_5, window_bounds = array<i64: 1, 1>}, {transform_indices = @transform_6, window_bounds = array<i64: 1, 8>}]} {
    %c0 = arith.constant 0 : index
    %c0_0 = arith.constant 0 : index
    %0 = vector.load %arg1[%c0, %c0_0] : memref<16x8xf32, #tpu.memory_space<vmem>>, vector<16x8xf32>
    %c0_1 = arith.constant 0 : index
    %c0_2 = arith.constant 0 : index
    %1 = vector.load %arg4[%c0_1, %c0_2] : memref<16x16xf32, #tpu.memory_space<vmem>>, vector<16x16xf32>
    %c0_3 = arith.constant 0 : index
    %c0_4 = arith.constant 0 : index
    %2 = vector.load %arg2[%c0_3, %c0_4] : memref<16x16xf32, #tpu.memory_space<vmem>>, vector<16x16xf32>
    %cst = arith.constant dense<0.000000e+00> : vector<16x8xf32>
    %3 = tpu.matmul %2, %0, %cst {dimension_numbers = #tpu.dot_dimension_numbers<[1], [0], [0], [1], [0, 0, 1, 1], [], []>} : vector<16x16xf32>, vector<16x8xf32>, vector<16x8xf32> -> vector<16x8xf32>
    %c0_5 = arith.constant 0 : index
    %c0_6 = arith.constant 0 : index
    %4 = vector.load %arg3[%c0_5, %c0_6] : memref<16x1xf32, #tpu.memory_space<vmem>>, vector<16x1xf32>
    %5 = vector.broadcast %4 : vector<16x1xf32> to vector<16x8xf32>
    %6 = arith.addf %3, %5 : vector<16x8xf32>
    %7 = math.tanh %6 : vector<16x8xf32>
    %8 = math.tanh %7 : vector<16x8xf32>
    %cst_7 = arith.constant dense<0.000000e+00> : vector<16x8xf32>
    %9 = tpu.matmul %1, %8, %cst_7 {dimension_numbers = #tpu.dot_dimension_numbers<[1], [0], [0], [1], [0, 0, 1, 1], [], []>} : vector<16x16xf32>, vector<16x8xf32>, vector<16x8xf32> -> vector<16x8xf32>
    %10 = arith.addf %9, %7 : vector<16x8xf32>
    %11 = math.tanh %10 : vector<16x8xf32>
    %12 = arith.subf %11, %8 : vector<16x8xf32>
    %13 = arith.mulf %12, %12 : vector<16x8xf32>
    %14 = vector.shape_cast %13 : vector<16x8xf32> to vector<1x16x8xf32>
    %cst_8 = arith.constant dense<0.000000e+00> : vector<1xf32>
    %15 = vector.multi_reduction <add>, %14, %cst_8 [1, 2] : vector<1x16x8xf32> to vector<1xf32>
    %16 = vector.shape_cast %15 : vector<1xf32> to vector<1x1x1xf32>
    %17 = vector.extract %16[0, 0, 0] : f32 from vector<1x1x1xf32>
    %c2_i32 = arith.constant 2 : i32
    %18:3 = scf.while (%arg8 = %11, %arg9 = %17, %arg10 = %c2_i32) : (vector<16x8xf32>, f32, i32) -> (vector<16x8xf32>, f32, i32) {
      %c50_i32 = arith.constant 50 : i32
      %28 = arith.cmpi slt, %arg10, %c50_i32 : i32
      %cst_16 = arith.constant 9.99999993E-9 : f32
      %29 = arith.cmpf oge, %arg9, %cst_16 : f32
      %30 = arith.andi %28, %29 : i1
      scf.condition(%30) %arg8, %arg9, %arg10 : vector<16x8xf32>, f32, i32
    } do {
    ^bb0(%arg8: vector<16x8xf32>, %arg9: f32, %arg10: i32):
      %cst_16 = arith.constant dense<0.000000e+00> : vector<16x8xf32>
      %28 = tpu.matmul %1, %arg8, %cst_16 {dimension_numbers = #tpu.dot_dimension_numbers<[1], [0], [0], [1], [0, 0, 1, 1], [], []>} : vector<16x16xf32>, vector<16x8xf32>, vector<16x8xf32> -> vector<16x8xf32>
      %29 = arith.addf %28, %7 : vector<16x8xf32>
      %30 = math.tanh %29 : vector<16x8xf32>
      %cst_17 = arith.constant dense<0.000000e+00> : vector<16x8xf32>
      %31 = tpu.matmul %1, %30, %cst_17 {dimension_numbers = #tpu.dot_dimension_numbers<[1], [0], [0], [1], [0, 0, 1, 1], [], []>} : vector<16x16xf32>, vector<16x8xf32>, vector<16x8xf32> -> vector<16x8xf32>
      %32 = arith.addf %31, %7 : vector<16x8xf32>
      %33 = math.tanh %32 : vector<16x8xf32>
      %cst_18 = arith.constant dense<0.000000e+00> : vector<16x8xf32>
      %34 = tpu.matmul %1, %33, %cst_18 {dimension_numbers = #tpu.dot_dimension_numbers<[1], [0], [0], [1], [0, 0, 1, 1], [], []>} : vector<16x16xf32>, vector<16x8xf32>, vector<16x8xf32> -> vector<16x8xf32>
      %35 = arith.addf %34, %7 : vector<16x8xf32>
      %36 = math.tanh %35 : vector<16x8xf32>
      %cst_19 = arith.constant dense<0.000000e+00> : vector<16x8xf32>
      %37 = tpu.matmul %1, %36, %cst_19 {dimension_numbers = #tpu.dot_dimension_numbers<[1], [0], [0], [1], [0, 0, 1, 1], [], []>} : vector<16x16xf32>, vector<16x8xf32>, vector<16x8xf32> -> vector<16x8xf32>
      %38 = arith.addf %37, %7 : vector<16x8xf32>
      %39 = math.tanh %38 : vector<16x8xf32>
      %cst_20 = arith.constant dense<0.000000e+00> : vector<16x8xf32>
      %40 = tpu.matmul %1, %39, %cst_20 {dimension_numbers = #tpu.dot_dimension_numbers<[1], [0], [0], [1], [0, 0, 1, 1], [], []>} : vector<16x16xf32>, vector<16x8xf32>, vector<16x8xf32> -> vector<16x8xf32>
      %41 = arith.addf %40, %7 : vector<16x8xf32>
      %42 = math.tanh %41 : vector<16x8xf32>
      %cst_21 = arith.constant dense<0.000000e+00> : vector<16x8xf32>
      %43 = tpu.matmul %1, %42, %cst_21 {dimension_numbers = #tpu.dot_dimension_numbers<[1], [0], [0], [1], [0, 0, 1, 1], [], []>} : vector<16x16xf32>, vector<16x8xf32>, vector<16x8xf32> -> vector<16x8xf32>
      %44 = arith.addf %43, %7 : vector<16x8xf32>
      %45 = math.tanh %44 : vector<16x8xf32>
      %cst_22 = arith.constant dense<0.000000e+00> : vector<16x8xf32>
      %46 = tpu.matmul %1, %45, %cst_22 {dimension_numbers = #tpu.dot_dimension_numbers<[1], [0], [0], [1], [0, 0, 1, 1], [], []>} : vector<16x16xf32>, vector<16x8xf32>, vector<16x8xf32> -> vector<16x8xf32>
      %47 = arith.addf %46, %7 : vector<16x8xf32>
      %48 = math.tanh %47 : vector<16x8xf32>
      %cst_23 = arith.constant dense<0.000000e+00> : vector<16x8xf32>
      %49 = tpu.matmul %1, %48, %cst_23 {dimension_numbers = #tpu.dot_dimension_numbers<[1], [0], [0], [1], [0, 0, 1, 1], [], []>} : vector<16x16xf32>, vector<16x8xf32>, vector<16x8xf32> -> vector<16x8xf32>
      %50 = arith.addf %49, %7 : vector<16x8xf32>
      %51 = math.tanh %50 : vector<16x8xf32>
      %cst_24 = arith.constant dense<0.000000e+00> : vector<16x8xf32>
      %52 = tpu.matmul %1, %51, %cst_24 {dimension_numbers = #tpu.dot_dimension_numbers<[1], [0], [0], [1], [0, 0, 1, 1], [], []>} : vector<16x16xf32>, vector<16x8xf32>, vector<16x8xf32> -> vector<16x8xf32>
      %53 = arith.addf %52, %7 : vector<16x8xf32>
      %54 = math.tanh %53 : vector<16x8xf32>
      %cst_25 = arith.constant dense<0.000000e+00> : vector<16x8xf32>
      %55 = tpu.matmul %1, %54, %cst_25 {dimension_numbers = #tpu.dot_dimension_numbers<[1], [0], [0], [1], [0, 0, 1, 1], [], []>} : vector<16x16xf32>, vector<16x8xf32>, vector<16x8xf32> -> vector<16x8xf32>
      %56 = arith.addf %55, %7 : vector<16x8xf32>
      %57 = math.tanh %56 : vector<16x8xf32>
      %cst_26 = arith.constant dense<0.000000e+00> : vector<16x8xf32>
      %58 = tpu.matmul %1, %57, %cst_26 {dimension_numbers = #tpu.dot_dimension_numbers<[1], [0], [0], [1], [0, 0, 1, 1], [], []>} : vector<16x16xf32>, vector<16x8xf32>, vector<16x8xf32> -> vector<16x8xf32>
      %59 = arith.addf %58, %7 : vector<16x8xf32>
      %60 = math.tanh %59 : vector<16x8xf32>
      %cst_27 = arith.constant dense<0.000000e+00> : vector<16x8xf32>
      %61 = tpu.matmul %1, %60, %cst_27 {dimension_numbers = #tpu.dot_dimension_numbers<[1], [0], [0], [1], [0, 0, 1, 1], [], []>} : vector<16x16xf32>, vector<16x8xf32>, vector<16x8xf32> -> vector<16x8xf32>
      %62 = arith.addf %61, %7 : vector<16x8xf32>
      %63 = math.tanh %62 : vector<16x8xf32>
      %cst_28 = arith.constant dense<0.000000e+00> : vector<16x8xf32>
      %64 = tpu.matmul %1, %63, %cst_28 {dimension_numbers = #tpu.dot_dimension_numbers<[1], [0], [0], [1], [0, 0, 1, 1], [], []>} : vector<16x16xf32>, vector<16x8xf32>, vector<16x8xf32> -> vector<16x8xf32>
      %65 = arith.addf %64, %7 : vector<16x8xf32>
      %66 = math.tanh %65 : vector<16x8xf32>
      %cst_29 = arith.constant dense<0.000000e+00> : vector<16x8xf32>
      %67 = tpu.matmul %1, %66, %cst_29 {dimension_numbers = #tpu.dot_dimension_numbers<[1], [0], [0], [1], [0, 0, 1, 1], [], []>} : vector<16x16xf32>, vector<16x8xf32>, vector<16x8xf32> -> vector<16x8xf32>
      %68 = arith.addf %67, %7 : vector<16x8xf32>
      %69 = math.tanh %68 : vector<16x8xf32>
      %cst_30 = arith.constant dense<0.000000e+00> : vector<16x8xf32>
      %70 = tpu.matmul %1, %69, %cst_30 {dimension_numbers = #tpu.dot_dimension_numbers<[1], [0], [0], [1], [0, 0, 1, 1], [], []>} : vector<16x16xf32>, vector<16x8xf32>, vector<16x8xf32> -> vector<16x8xf32>
      %71 = arith.addf %70, %7 : vector<16x8xf32>
      %72 = math.tanh %71 : vector<16x8xf32>
      %cst_31 = arith.constant dense<0.000000e+00> : vector<16x8xf32>
      %73 = tpu.matmul %1, %72, %cst_31 {dimension_numbers = #tpu.dot_dimension_numbers<[1], [0], [0], [1], [0, 0, 1, 1], [], []>} : vector<16x16xf32>, vector<16x8xf32>, vector<16x8xf32> -> vector<16x8xf32>
      %74 = arith.addf %73, %7 : vector<16x8xf32>
      %75 = math.tanh %74 : vector<16x8xf32>
      %cst_32 = arith.constant dense<0.000000e+00> : vector<16x8xf32>
      %76 = tpu.matmul %1, %75, %cst_32 {dimension_numbers = #tpu.dot_dimension_numbers<[1], [0], [0], [1], [0, 0, 1, 1], [], []>} : vector<16x16xf32>, vector<16x8xf32>, vector<16x8xf32> -> vector<16x8xf32>
      %77 = arith.addf %76, %7 : vector<16x8xf32>
      %78 = math.tanh %77 : vector<16x8xf32>
      %cst_33 = arith.constant dense<0.000000e+00> : vector<16x8xf32>
      %79 = tpu.matmul %1, %78, %cst_33 {dimension_numbers = #tpu.dot_dimension_numbers<[1], [0], [0], [1], [0, 0, 1, 1], [], []>} : vector<16x16xf32>, vector<16x8xf32>, vector<16x8xf32> -> vector<16x8xf32>
      %80 = arith.addf %79, %7 : vector<16x8xf32>
      %81 = math.tanh %80 : vector<16x8xf32>
      %cst_34 = arith.constant dense<0.000000e+00> : vector<16x8xf32>
      %82 = tpu.matmul %1, %81, %cst_34 {dimension_numbers = #tpu.dot_dimension_numbers<[1], [0], [0], [1], [0, 0, 1, 1], [], []>} : vector<16x16xf32>, vector<16x8xf32>, vector<16x8xf32> -> vector<16x8xf32>
      %83 = arith.addf %82, %7 : vector<16x8xf32>
      %84 = math.tanh %83 : vector<16x8xf32>
      %cst_35 = arith.constant dense<0.000000e+00> : vector<16x8xf32>
      %85 = tpu.matmul %1, %84, %cst_35 {dimension_numbers = #tpu.dot_dimension_numbers<[1], [0], [0], [1], [0, 0, 1, 1], [], []>} : vector<16x16xf32>, vector<16x8xf32>, vector<16x8xf32> -> vector<16x8xf32>
      %86 = arith.addf %85, %7 : vector<16x8xf32>
      %87 = math.tanh %86 : vector<16x8xf32>
      %cst_36 = arith.constant dense<0.000000e+00> : vector<16x8xf32>
      %88 = tpu.matmul %1, %87, %cst_36 {dimension_numbers = #tpu.dot_dimension_numbers<[1], [0], [0], [1], [0, 0, 1, 1], [], []>} : vector<16x16xf32>, vector<16x8xf32>, vector<16x8xf32> -> vector<16x8xf32>
      %89 = arith.addf %88, %7 : vector<16x8xf32>
      %90 = math.tanh %89 : vector<16x8xf32>
      %cst_37 = arith.constant dense<0.000000e+00> : vector<16x8xf32>
      %91 = tpu.matmul %1, %90, %cst_37 {dimension_numbers = #tpu.dot_dimension_numbers<[1], [0], [0], [1], [0, 0, 1, 1], [], []>} : vector<16x16xf32>, vector<16x8xf32>, vector<16x8xf32> -> vector<16x8xf32>
      %92 = arith.addf %91, %7 : vector<16x8xf32>
      %93 = math.tanh %92 : vector<16x8xf32>
      %cst_38 = arith.constant dense<0.000000e+00> : vector<16x8xf32>
      %94 = tpu.matmul %1, %93, %cst_38 {dimension_numbers = #tpu.dot_dimension_numbers<[1], [0], [0], [1], [0, 0, 1, 1], [], []>} : vector<16x16xf32>, vector<16x8xf32>, vector<16x8xf32> -> vector<16x8xf32>
      %95 = arith.addf %94, %7 : vector<16x8xf32>
      %96 = math.tanh %95 : vector<16x8xf32>
      %cst_39 = arith.constant dense<0.000000e+00> : vector<16x8xf32>
      %97 = tpu.matmul %1, %96, %cst_39 {dimension_numbers = #tpu.dot_dimension_numbers<[1], [0], [0], [1], [0, 0, 1, 1], [], []>} : vector<16x16xf32>, vector<16x8xf32>, vector<16x8xf32> -> vector<16x8xf32>
      %98 = arith.addf %97, %7 : vector<16x8xf32>
      %99 = math.tanh %98 : vector<16x8xf32>
      %100 = arith.subf %96, %99 : vector<16x8xf32>
      %101 = arith.mulf %100, %100 : vector<16x8xf32>
      %102 = vector.shape_cast %101 : vector<16x8xf32> to vector<1x16x8xf32>
      %cst_40 = arith.constant dense<0.000000e+00> : vector<1xf32>
      %103 = vector.multi_reduction <add>, %102, %cst_40 [1, 2] : vector<1x16x8xf32> to vector<1xf32>
      %104 = vector.shape_cast %103 : vector<1xf32> to vector<1x1x1xf32>
      %105 = vector.extract %104[0, 0, 0] : f32 from vector<1x1x1xf32>
      %c24_i32 = arith.constant 24 : i32
      %106 = arith.addi %arg10, %c24_i32 : i32
      scf.yield %99, %105, %106 : vector<16x8xf32>, f32, i32
    }
    %c0_9 = arith.constant 0 : index
    %c0_10 = arith.constant 0 : index
    %19 = vector.load %arg5[%c0_9, %c0_10] : memref<16x1xf32, #tpu.memory_space<vmem>>, vector<16x1xf32>
    %20 = vector.broadcast %19 : vector<16x1xf32> to vector<16x8xf32>
    %21 = arith.mulf %18#0, %20 : vector<16x8xf32>
    %cst_11 = arith.constant dense<0.000000e+00> : vector<8xf32>
    %22 = vector.multi_reduction <add>, %21, %cst_11 [0] : vector<16x8xf32> to vector<8xf32>
    %23 = vector.shape_cast %22 : vector<8xf32> to vector<1x8xf32>
    %c0_12 = arith.constant 0 : index
    %c0_13 = arith.constant 0 : index
    %24 = memref.load %arg6[%c0_12, %c0_13] : memref<1x1xf32, #tpu.memory_space<smem>>
    %25 = vector.broadcast %24 : f32 to vector<1x8xf32>
    %26 = arith.addf %23, %25 : vector<1x8xf32>
    %c0_14 = arith.constant 0 : index
    %c0_15 = arith.constant 0 : index
    %27 = vector.load %arg7[%c0_14, %c0_15] : memref<1x8xf32, #tpu.memory_space<vmem>>, vector<1x8xf32>
    tpu.vector_store %arg7[%c0_14, %c0_15], %26 {strides = array<i32>} : memref<1x8xf32, #tpu.memory_space<vmem>>, vector<1x8xf32>,
    return
  }
  func.func @transform_0(%arg0: i32) -> (i32, i32) {
    %c0_i32 = arith.constant 0 : i32
    %c0_i32_0 = arith.constant 0 : i32
    return %c0_i32, %arg0 : i32, i32
  }
  func.func @transform_1(%arg0: i32) -> (i32, i32) {
    %c0_i32 = arith.constant 0 : i32
    %c0_i32_0 = arith.constant 0 : i32
    %c0_i32_1 = arith.constant 0 : i32
    return %c0_i32, %c0_i32_0 : i32, i32
  }
  func.func @transform_2(%arg0: i32) -> (i32, i32) {
    %c0_i32 = arith.constant 0 : i32
    %c0_i32_0 = arith.constant 0 : i32
    %c0_i32_1 = arith.constant 0 : i32
    return %c0_i32, %c0_i32_0 : i32, i32
  }
  func.func @transform_3(%arg0: i32) -> (i32, i32) {
    %c0_i32 = arith.constant 0 : i32
    %c0_i32_0 = arith.constant 0 : i32
    %c0_i32_1 = arith.constant 0 : i32
    return %c0_i32, %c0_i32_0 : i32, i32
  }
  func.func @transform_4(%arg0: i32) -> (i32, i32) {
    %c0_i32 = arith.constant 0 : i32
    %c0_i32_0 = arith.constant 0 : i32
    %c0_i32_1 = arith.constant 0 : i32
    return %c0_i32, %c0_i32_0 : i32, i32
  }
  func.func @transform_5(%arg0: i32) -> (i32, i32) {
    %c0_i32 = arith.constant 0 : i32
    %c0_i32_0 = arith.constant 0 : i32
    %c0_i32_1 = arith.constant 0 : i32
    return %c0_i32, %c0_i32_0 : i32, i32
  }
  func.func @transform_6(%arg0: i32) -> (i32, i32) {
    %c0_i32 = arith.constant 0 : i32
    %c0_i32_0 = arith.constant 0 : i32
    return %c0_i32, %arg0 : i32, i32
  }
}

</mosaic_0001>

<bundles_post_ra>
// kernel: tpu_custom_call.1
= control target key start
LH: loop header
LB: loop body
LE: loop exit
PB: predicated region body
PF: predicated region fallthrough
CT: control target
= control target key end

     0   :  { %s1361_s0 = inlined_call_operand.vmem [shape: f32[16,8], index: 0, kind: input, shape index: {}]   ;;  %s1362_s1 = inlined_call_operand.vmem [shape: f32[16,16], index: 1, kind: input, shape index: {}]   ;;  %s1363_s2 = inlined_call_operand.vmem [shape: f32[16,1], index: 2, kind: input, shape index: {}]   ;;  %s1364_s3 = inlined_call_operand.vmem [shape: f32[16,16], index: 3, kind: input, shape index: {}]   ;;  %s1365_s4 = inlined_call_operand.vmem [shape: f32[16,1], index: 4, kind: input, shape index: {}]   ;;  %s1366_s5 = inlined_call_operand.<no memory space> [shape: f32[1,1], index: 5, kind: input, shape index: {}]   ;;  %s1367_s6 = inlined_call_operand.hbm [shape: f32[1,8], index: 6, kind: output, shape index: {}]  }
   0x1   :  { %11 = sst [smem:[#allocation2]] %s1366_s5 }
   0x2   :  { %12 = vsyncpa [#allocation4], 0  ;;  %v26_v0 = vld [vmem:[%s1361_s0 + $0x8] sm:$0xff]  ;;  %v25_v1 = vld [vmem:[%s1361_s0] sm:$0xff]  ;;  %vm43_vm0 = vcmask 130048   ;;  %v1090_v4 = vmov 0  }
   0x3   :  { %64 = vmatpush.msra.mxu0 %v26_v0  ;;  %864 = vmatpush.msra.mxu2 %v26_v0  ;;  %v29_v2 = vld [vmem:[%s1362_s1] sm:$0xff]  ;;  %v30_v3 = vld [vmem:[%s1362_s1 + $0x8] sm:$0xff]  ;;  %vm112_vm1 = vcmask 64512  }
   0x4   :  { %914 = vset.pattern.permute.xlu0 %v1090_v4  ;;  %v32_v5 = vld [vmem:[%s1363_s2 + $0x8] sm:$0xff]  ;;  %v31_v6 = vld [vmem:[%s1363_s2] sm:$0xff] }
   0x5   :  { %65 = vmatpush.msra.mxu0 %v25_v1  ;;  %865 = vmatpush.msra.mxu2 %v25_v1  ;;  %v1160_v16 = vld [vmem:[%s1364_s3] sm:$0xff]  ;;  %v1165_v17 = vld [vmem:[%s1364_s3 + $0x8] sm:$0xff] }
   0x6   :  { %811 = vmatmul.msk.f32.vlgmr.msra.gmra.mxu0 %vm43_vm0, %v29_v2  ;;  %812 = vmatmul.msk.f32.vlgmr.msra.gmra.mxu2 %vm43_vm0, %v30_v3 }
   0x7   :  { %40 = vperm.xlu0 %914, %v32_v5  }
   0xf   :  { %35 = vperm.xlu0 %914, %v31_v6  }
  0x79   :  { %v41_v7 = vpop.permute.xlu0 %40 }
  0x81   :  { %v36_v8 = vpop.permute.xlu0 %35 }
  0x83   :  { %v67_v9 = vpop.f32.mrf.mxu0 }
  0x84   :  { %v68_v10 = vadd.f32 %v67_v9, %v36_v8 }
  0x86   :  { %915 = vtanh.f32 %v68_v10 }
  0x89   :  { %v70_v11 = vpop.f32.mrf.mxu2 }
  0x8a   :  { %v71_v12 = vadd.f32 %v70_v11, %v41_v7 }
  0x8c   :  { %917 = vtanh.f32 %v71_v12  ;;  %v1151_v13 = vpop.eup %915 }
  0x92   :  { %v1153_v14 = vpop.eup %917 }
  0x93   :  { %919 = vtanh.f32 %v1153_v14 }
  0x94   :  { %921 = vtanh.f32 %v1151_v13 }
  0x99   :  { %v920_v15 = vpop.eup %919 }
  0x9a   :  { %97 = vmatpush.msra.mxu1 %v920_v15  ;;  %866 = vmatpush.msra.mxu3 %v920_v15  ;;  %v922_v18 = vpop.eup %921 }
  0x9c   :  { %98 = vmatpush.msra.mxu1 %v922_v18  ;;  %867 = vmatpush.msra.mxu3 %v922_v18 }
  0x9d   :  { %813 = vmatmul.msk.f32.vlgmr.msra.gmra.mxu1 %vm43_vm0, %v1160_v16  ;;  %814 = vmatmul.msk.f32.vlgmr.msra.gmra.mxu3 %vm43_vm0, %v1165_v17 }
 0x11a   :  { %v100_v19 = vpop.f32.mrf.mxu1 }
 0x11b   :  { %v101_v20 = vadd.f32 %v1151_v13, %v100_v19 }
 0x11d   :  { %923 = vtanh.f32 %v101_v20 }
 0x120   :  { %v103_v21 = vpop.f32.mrf.mxu3 }
 0x121   :  { %v104_v22 = vadd.f32 %v1153_v14, %v103_v21 }
 0x123   :  { %v924_v23 = vpop.eup %923   ;;  %925 = vtanh.f32 %v104_v22 }
 0x124   :  { %v108_v24 = vsub.f32 %v924_v23, %v922_v18  ;;  %v1369_v40 = vmov %v924_v23 }
 0x126   :  { %v110_v27 = vmul.f32 %v108_v24, %v108_v24 }
 0x128   :  { %v113_v29 = vsel %vm112_vm1, %v110_v27, 0.0 }
 0x129   :  { %v926_v25 = vpop.eup %925  }
 0x12a   :  { %v109_v26 = vsub.f32 %v926_v25, %v920_v15  ;;  %v1368_v39 = vmov %v926_v25 }
 0x12c   :  { %v111_v28 = vmul.f32 %v109_v26, %v109_v26 }
 0x12e   :  { %v114_v30 = vsel %vm112_vm1, %v111_v28, 0.0 }
 0x12f   :  { %v115_v31 = vadd.f32 %v114_v30, %v113_v29 }
 0x131   :  { %116 = vadd.xlane.f32.xlu1 %v115_v31 }
 0x1a4   :  { %v117_v32 = vpop.xlane.xlu1 %116 }
 0x1a5   :  { %v118_v33 = vrot.slane %v117_v32, 4 }
 0x1a7   :  { %v119_v34 = vadd.f32 %v118_v33, %v117_v32 }
 0x1a9   :  { %v120_v35 = vrot.slane %v119_v34, 2 }
 0x1ab   :  { %v121_v36 = vadd.f32 %v120_v35, %v119_v34 }
 0x1ad   :  { %v122_v37 = vrot.slane %v121_v36, 1 }
 0x1af   :  { %v123_v38 = vadd.f32 %v122_v37, %v121_v36 }
 0x1b1   :  { %868 = vpush %v123_v38 }
 0x1e2   :  { %s869_s3 = spop %868 }
 0x1e3   :  { %p802_p0 = scmp.ge.f32.partialorder %s869_s3, 1e-08 }
 0x1e4   :  { %s1179_s11 = smov (%p802_p0), 2  }
 0x1e5   :  { %804 = sbr.rel (!%p802_p0) target bundleno = 4260 (0x10a4), region = 45 }
 0x1ea LB: > { %150 = vmatpush.msra.mxu0 %v1076_v25  ;;  %s752_s11 = sadd.s32 24, %s1072_s11   ;;  %v1080_v23 = vphi %v924_v23, %v1371_v23   ;;  %v1076_v25 = vphi %v926_v25, %v1370_v25   ;;  %s1072_s11 = sphi %s1179_s11, %s752_s11  }
 0x1eb   : > { %p130_p1 = scmp.lt.s32.totalorder %s752_s11, 50 }
 0x1ec   : > { %151 = vmatpush.msra.mxu0 %v1080_v23 }
 0x1ed   : > { %816 = vmatmul.msk.f32.vlgmr.msra.gmra.mxu0 %vm43_vm0, %v1160_v16 }
 0x1f5   : > { %817 = vmatmul.msk.f32.gmra.mxu0 %vm43_vm0, %v1165_v17 }
 0x26a   : > { %v153_v41 = vpop.f32.mrf.mxu0 }
 0x26b   : > { %v154_v43 = vadd.f32 %v1151_v13, %v153_v41 }
 0x272   : > { %v156_v42 = vpop.f32.mrf.mxu0 }
 0x273   : > { %v157_v44 = vadd.f32 %v1153_v14, %v156_v42 }
 0x275   : > { %927 = vtanh.f32 %v157_v44 }
 0x276   : > { %929 = vtanh.f32 %v154_v43 }
 0x27b   : > { %v928_v45 = vpop.eup %927 }
 0x27c   : > { %175 = vmatpush.msra.mxu1 %v928_v45  ;;  %v930_v46 = vpop.eup %929 }
 0x27e   : > { %176 = vmatpush.msra.mxu1 %v930_v46 }
 0x27f   : > { %818 = vmatmul.msk.f32.vlgmr.msra.gmra.mxu1 %vm43_vm0, %v1160_v16 }
 0x287   : > { %819 = vmatmul.msk.f32.gmra.mxu1 %vm43_vm0, %v1165_v17 }
 0x2fc   : > { %v178_v47 = vpop.f32.mrf.mxu1 }
 0x2fd   : > { %v179_v49 = vadd.f32 %v1151_v13, %v178_v47 }
 0x304   : > { %v181_v48 = vpop.f32.mrf.mxu1 }
 0x305   : > { %v182_v50 = vadd.f32 %v1153_v14, %v181_v48 }
 0x307   : > { %931 = vtanh.f32 %v182_v50 }
 0x308   : > { %933 = vtanh.f32 %v179_v49 }
 0x30d   : > { %v932_v51 = vpop.eup %931 }
 0x30e   : > { %200 = vmatpush.msra.mxu2 %v932_v51  ;;  %v934_v52 = vpop.eup %933 }
 0x310   : > { %201 = vmatpush.msra.mxu2 %v934_v52 }
 0x311   : > { %820 = vmatmul.msk.f32.vlgmr.msra.gmra.mxu2 %vm43_vm0, %v1160_v16 }
 0x319   : > { %821 = vmatmul.msk.f32.gmra.mxu2 %vm43_vm0, %v1165_v17 }
 0x394   : > { %v203_v53 = vpop.f32.mrf.mxu2 }
 0x395   : > { %v204_v55 = vadd.f32 %v1151_v13, %v203_v53 }
 0x39c   : > { %v206_v54 = vpop.f32.mrf.mxu2 }
 0x39d   : > { %v207_v56 = vadd.f32 %v1153_v14, %v206_v54 }
 0x39f   : > { %935 = vtanh.f32 %v207_v56 }
 0x3a0   : > { %937 = vtanh.f32 %v204_v55 }
 0x3a5   : > { %v936_v57 = vpop.eup %935 }
 0x3a6   : > { %225 = vmatpush.msra.mxu3 %v936_v57  ;;  %v938_v58 = vpop.eup %937 }
 0x3a8   : > { %226 = vmatpush.msra.mxu3 %v938_v58 }
 0x3a9   : > { %822 = vmatmul.msk.f32.vlgmr.msra.gmra.mxu3 %vm43_vm0, %v1160_v16 }
 0x3b1   : > { %823 = vmatmul.msk.f32.gmra.mxu3 %vm43_vm0, %v1165_v17 }
 0x42c   : > { %v228_v59 = vpop.f32.mrf.mxu3 }
 0x42d   : > { %v229_v61 = vadd.f32 %v1151_v13, %v228_v59 }
 0x434   : > { %v231_v60 = vpop.f32.mrf.mxu3 }
 0x435   : > { %v232_v62 = vadd.f32 %v1153_v14, %v231_v60 }
 0x437   : > { %939 = vtanh.f32 %v232_v62 }
 0x438   : > { %941 = vtanh.f32 %v229_v61 }
 0x43d   : > { %v940_v63 = vpop.eup %939 }
 0x43e   : > { %250 = vmatpush.msrb.mxu0 %v940_v63  ;;  %v942_v0 = vpop.eup %941 }
 0x440   : > { %251 = vmatpush.msrb.mxu0 %v942_v0 }
 0x441   : > { %824 = vmatmul.msk.f32.vlgmr.msrb.gmra.mxu0 %vm43_vm0, %v1160_v16 }
 0x449   : > { %825 = vmatmul.msk.f32.gmra.mxu0 %vm43_vm0, %v1165_v17 }
 0x4be   : > { %v253_v1 = vpop.f32.mrf.mxu0 }
 0x4bf   : > { %v254_v3 = vadd.f32 %v1151_v13, %v253_v1 }
 0x4c6   : > { %v256_v2 = vpop.f32.mrf.mxu0 }
 0x4c7   : > { %v257_v5 = vadd.f32 %v1153_v14, %v256_v2 }
 0x4c9   : > { %943 = vtanh.f32 %v257_v5 }
 0x4ca   : > { %945 = vtanh.f32 %v254_v3 }
 0x4cf   : > { %v944_v6 = vpop.eup %943 }
 0x4d0   : > { %275 = vmatpush.msrb.mxu1 %v944_v6  ;;  %v946_v7 = vpop.eup %945 }
 0x4d2   : > { %276 = vmatpush.msrb.mxu1 %v946_v7 }
 0x4d3   : > { %826 = vmatmul.msk.f32.vlgmr.msrb.gmra.mxu1 %vm43_vm0, %v1160_v16 }
 0x4db   : > { %827 = vmatmul.msk.f32.gmra.mxu1 %vm43_vm0, %v1165_v17 }
 0x550   : > { %v278_v8 = vpop.f32.mrf.mxu1 }
 0x551   : > { %v279_v10 = vadd.f32 %v1151_v13, %v278_v8 }
 0x558   : > { %v281_v9 = vpop.f32.mrf.mxu1 }
 0x559   : > { %v282_v11 = vadd.f32 %v1153_v14, %v281_v9 }
 0x55b   : > { %947 = vtanh.f32 %v282_v11 }
 0x55c   : > { %949 = vtanh.f32 %v279_v10 }
 0x561   : > { %v948_v12 = vpop.eup %947 }
 0x562   : > { %300 = vmatpush.msrb.mxu2 %v948_v12  ;;  %v950_v15 = vpop.eup %949 }
 0x564   : > { %301 = vmatpush.msrb.mxu2 %v950_v15 }
 0x565   : > { %828 = vmatmul.msk.f32.vlgmr.msrb.gmra.mxu2 %vm43_vm0, %v1160_v16 }
 0x56d   : > { %829 = vmatmul.msk.f32.gmra.mxu2 %vm43_vm0, %v1165_v17 }
 0x5e8   : > { %v303_v18 = vpop.f32.mrf.mxu2 }
 0x5e9   : > { %v304_v20 = vadd.f32 %v1151_v13, %v303_v18 }
 0x5f0   : > { %v306_v19 = vpop.f32.mrf.mxu2 }
 0x5f1   : > { %v307_v21 = vadd.f32 %v1153_v14, %v306_v19 }
 0x5f3   : > { %951 = vtanh.f32 %v307_v21 }
 0x5f4   : > { %953 = vtanh.f32 %v304_v20 }
 0x5f9   : > { %v952_v22 = vpop.eup %951 }
 0x5fa   : > { %325 = vmatpush.msrb.mxu3 %v952_v22  ;;  %v954_v23 = vpop.eup %953 }
 0x5fc   : > { %326 = vmatpush.msrb.mxu3 %v954_v23 }
 0x5fd   : > { %830 = vmatmul.msk.f32.vlgmr.msrb.gmra.mxu3 %vm43_vm0, %v1160_v16 }
 0x605   : > { %831 = vmatmul.msk.f32.gmra.mxu3 %vm43_vm0, %v1165_v17 }
 0x680   : > { %v328_v24 = vpop.f32.mrf.mxu3 }
 0x681   : > { %v329_v26 = vadd.f32 %v1151_v13, %v328_v24 }
 0x688   : > { %v331_v25 = vpop.f32.mrf.mxu3 }
 0x689   : > { %v332_v27 = vadd.f32 %v1153_v14, %v331_v25 }
 0x68b   : > { %955 = vtanh.f32 %v332_v27 }
 0x68c   : > { %957 = vtanh.f32 %v329_v26 }
 0x691   : > { %v956_v28 = vpop.eup %955 }
 0x692   : > { %350 = vmatpush.msra.mxu0 %v956_v28  ;;  %v958_v29 = vpop.eup %957 }
 0x694   : > { %351 = vmatpush.msra.mxu0 %v958_v29 }
 0x695   : > { %832 = vmatmul.msk.f32.vlgmr.msra.gmra.mxu0 %vm43_vm0, %v1160_v16 }
 0x69d   : > { %833 = vmatmul.msk.f32.gmra.mxu0 %vm43_vm0, %v1165_v17 }
 0x712   : > { %v353_v30 = vpop.f32.mrf.mxu0 }
 0x713   : > { %v354_v32 = vadd.f32 %v1151_v13, %v353_v30 }
 0x71a   : > { %v356_v31 = vpop.f32.mrf.mxu0 }
 0x71b   : > { %v357_v33 = vadd.f32 %v1153_v14, %v356_v31 }
 0x71d   : > { %959 = vtanh.f32 %v357_v33 }
 0x71e   : > { %961 = vtanh.f32 %v354_v32 }
 0x723   : > { %v960_v34 = vpop.eup %959 }
 0x724   : > { %375 = vmatpush.msra.mxu1 %v960_v34  ;;  %v962_v35 = vpop.eup %961 }
 0x726   : > { %376 = vmatpush.msra.mxu1 %v962_v35 }
 0x727   : > { %834 = vmatmul.msk.f32.vlgmr.msra.gmra.mxu1 %vm43_vm0, %v1160_v16 }
 0x72f   : > { %835 = vmatmul.msk.f32.gmra.mxu1 %vm43_vm0, %v1165_v17 }
 0x7a4   : > { %v378_v36 = vpop.f32.mrf.mxu1 }
 0x7a5   : > { %v379_v38 = vadd.f32 %v1151_v13, %v378_v36 }
 0x7ac   : > { %v381_v37 = vpop.f32.mrf.mxu1 }
 0x7ad   : > { %v382_v39 = vadd.f32 %v1153_v14, %v381_v37 }
 0x7af   : > { %963 = vtanh.f32 %v382_v39 }
 0x7b0   : > { %965 = vtanh.f32 %v379_v38 }
 0x7b5   : > { %v964_v40 = vpop.eup %963 }
 0x7b6   : > { %400 = vmatpush.msra.mxu2 %v964_v40  ;;  %v966_v41 = vpop.eup %965 }
 0x7b8   : > { %401 = vmatpush.msra.mxu2 %v966_v41 }
 0x7b9   : > { %836 = vmatmul.msk.f32.vlgmr.msra.gmra.mxu2 %vm43_vm0, %v1160_v16 }
 0x7c1   : > { %837 = vmatmul.msk.f32.gmra.mxu2 %vm43_vm0, %v1165_v17 }
 0x83c   : > { %v403_v42 = vpop.f32.mrf.mxu2 }
 0x83d   : > { %v404_v44 = vadd.f32 %v1151_v13, %v403_v42 }
 0x844   : > { %v406_v43 = vpop.f32.mrf.mxu2 }
 0x845   : > { %v407_v45 = vadd.f32 %v1153_v14, %v406_v43 }
 0x847   : > { %967 = vtanh.f32 %v407_v45 }
 0x848   : > { %969 = vtanh.f32 %v404_v44 }
 0x84d   : > { %v968_v46 = vpop.eup %967 }
 0x84e   : > { %425 = vmatpush.msra.mxu3 %v968_v46  ;;  %v970_v47 = vpop.eup %969 }
 0x850   : > { %426 = vmatpush.msra.mxu3 %v970_v47 }
 0x851   : > { %838 = vmatmul.msk.f32.vlgmr.msra.gmra.mxu3 %vm43_vm0, %v1160_v16 }
 0x859   : > { %839 = vmatmul.msk.f32.gmra.mxu3 %vm43_vm0, %v1165_v17 }
 0x8d4   : > { %v428_v48 = vpop.f32.mrf.mxu3 }
 0x8d5   : > { %v429_v50 = vadd.f32 %v1151_v13, %v428_v48 }
 0x8dc   : > { %v431_v49 = vpop.f32.mrf.mxu3 }
 0x8dd   : > { %v432_v51 = vadd.f32 %v1153_v14, %v431_v49 }
 0x8df   : > { %971 = vtanh.f32 %v432_v51 }
 0x8e0   : > { %973 = vtanh.f32 %v429_v50 }
 0x8e5   : > { %v972_v52 = vpop.eup %971 }
 0x8e6   : > { %450 = vmatpush.msrb.mxu0 %v972_v52  ;;  %v974_v53 = vpop.eup %973 }
 0x8e8   : > { %451 = vmatpush.msrb.mxu0 %v974_v53 }
 0x8e9   : > { %840 = vmatmul.msk.f32.vlgmr.msrb.gmra.mxu0 %vm43_vm0, %v1160_v16 }
 0x8f1   : > { %841 = vmatmul.msk.f32.gmra.mxu0 %vm43_vm0, %v1165_v17 }
 0x966   : > { %v453_v54 = vpop.f32.mrf.mxu0 }
 0x967   : > { %v454_v56 = vadd.f32 %v1151_v13, %v453_v54 }
 0x96e   : > { %v456_v55 = vpop.f32.mrf.mxu0 }
 0x96f   : > { %v457_v57 = vadd.f32 %v1153_v14, %v456_v55 }
 0x971   : > { %975 = vtanh.f32 %v457_v57 }
 0x972   : > { %977 = vtanh.f32 %v454_v56 }
 0x977   : > { %v976_v58 = vpop.eup %975 }
 0x978   : > { %475 = vmatpush.msrb.mxu1 %v976_v58  ;;  %v978_v59 = vpop.eup %977 }
 0x97a   : > { %476 = vmatpush.msrb.mxu1 %v978_v59 }
 0x97b   : > { %842 = vmatmul.msk.f32.vlgmr.msrb.gmra.mxu1 %vm43_vm0, %v1160_v16 }
 0x983   : > { %843 = vmatmul.msk.f32.gmra.mxu1 %vm43_vm0, %v1165_v17 }
 0x9f8   : > { %v478_v60 = vpop.f32.mrf.mxu1 }
 0x9f9   : > { %v479_v62 = vadd.f32 %v1151_v13, %v478_v60 }
 0xa00   : > { %v481_v61 = vpop.f32.mrf.mxu1 }
 0xa01   : > { %v482_v63 = vadd.f32 %v1153_v14, %v481_v61 }
 0xa03   : > { %979 = vtanh.f32 %v482_v63 }
 0xa04   : > { %981 = vtanh.f32 %v479_v62 }
 0xa09   : > { %v980_v0 = vpop.eup %979 }
 0xa0a   : > { %500 = vmatpush.msrb.mxu2 %v980_v0  ;;  %v982_v1 = vpop.eup %981 }
 0xa0c   : > { %501 = vmatpush.msrb.mxu2 %v982_v1 }
 0xa0d   : > { %844 = vmatmul.msk.f32.vlgmr.msrb.gmra.mxu2 %vm43_vm0, %v1160_v16 }
 0xa15   : > { %845 = vmatmul.msk.f32.gmra.mxu2 %vm43_vm0, %v1165_v17 }
 0xa90   : > { %v503_v2 = vpop.f32.mrf.mxu2 }
 0xa91   : > { %v504_v5 = vadd.f32 %v1151_v13, %v503_v2 }
 0xa98   : > { %v506_v3 = vpop.f32.mrf.mxu2 }
 0xa99   : > { %v507_v6 = vadd.f32 %v1153_v14, %v506_v3 }
 0xa9b   : > { %983 = vtanh.f32 %v507_v6 }
 0xa9c   : > { %985 = vtanh.f32 %v504_v5 }
 0xaa1   : > { %v984_v7 = vpop.eup %983 }
 0xaa2   : > { %525 = vmatpush.msrb.mxu3 %v984_v7  ;;  %v986_v8 = vpop.eup %985 }
 0xaa4   : > { %526 = vmatpush.msrb.mxu3 %v986_v8 }
 0xaa5   : > { %846 = vmatmul.msk.f32.vlgmr.msrb.gmra.mxu3 %vm43_vm0, %v1160_v16 }
 0xaad   : > { %847 = vmatmul.msk.f32.gmra.mxu3 %vm43_vm0, %v1165_v17 }
 0xb28   : > { %v528_v9 = vpop.f32.mrf.mxu3 }
 0xb29   : > { %v529_v11 = vadd.f32 %v1151_v13, %v528_v9 }
 0xb30   : > { %v531_v10 = vpop.f32.mrf.mxu3 }
 0xb31   : > { %v532_v12 = vadd.f32 %v1153_v14, %v531_v10 }
 0xb33   : > { %987 = vtanh.f32 %v532_v12 }
 0xb34   : > { %989 = vtanh.f32 %v529_v11 }
 0xb39   : > { %v988_v15 = vpop.eup %987 }
 0xb3a   : > { %550 = vmatpush.msra.mxu0 %v988_v15  ;;  %v990_v18 = vpop.eup %989 }
 0xb3c   : > { %551 = vmatpush.msra.mxu0 %v990_v18 }
 0xb3d   : > { %848 = vmatmul.msk.f32.vlgmr.msra.gmra.mxu0 %vm43_vm0, %v1160_v16 }
 0xb45   : > { %849 = vmatmul.msk.f32.gmra.mxu0 %vm43_vm0, %v1165_v17 }
 0xbba   : > { %v553_v19 = vpop.f32.mrf.mxu0 }
 0xbbb   : > { %v554_v21 = vadd.f32 %v1151_v13, %v553_v19 }
 0xbc2   : > { %v556_v20 = vpop.f32.mrf.mxu0 }
 0xbc3   : > { %v557_v22 = vadd.f32 %v1153_v14, %v556_v20 }
 0xbc5   : > { %991 = vtanh.f32 %v557_v22 }
 0xbc6   : > { %993 = vtanh.f32 %v554_v21 }
 0xbcb   : > { %v992_v23 = vpop.eup %991 }
 0xbcc   : > { %575 = vmatpush.msra.mxu1 %v992_v23  ;;  %v994_v24 = vpop.eup %993 }
 0xbce   : > { %576 = vmatpush.msra.mxu1 %v994_v24 }
 0xbcf   : > { %850 = vmatmul.msk.f32.vlgmr.msra.gmra.mxu1 %vm43_vm0, %v1160_v16 }
 0xbd7   : > { %851 = vmatmul.msk.f32.gmra.mxu1 %vm43_vm0, %v1165_v17 }
 0xc4c   : > { %v578_v25 = vpop.f32.mrf.mxu1 }
 0xc4d   : > { %v579_v27 = vadd.f32 %v1151_v13, %v578_v25 }
 0xc54   : > { %v581_v26 = vpop.f32.mrf.mxu1 }
 0xc55   : > { %v582_v28 = vadd.f32 %v1153_v14, %v581_v26 }
 0xc57   : > { %995 = vtanh.f32 %v582_v28 }
 0xc58   : > { %997 = vtanh.f32 %v579_v27 }
 0xc5d   : > { %v996_v29 = vpop.eup %995 }
 0xc5e   : > { %600 = vmatpush.msra.mxu2 %v996_v29  ;;  %v998_v30 = vpop.eup %997 }
 0xc60   : > { %601 = vmatpush.msra.mxu2 %v998_v30 }
 0xc61   : > { %852 = vmatmul.msk.f32.vlgmr.msra.gmra.mxu2 %vm43_vm0, %v1160_v16 }
 0xc69   : > { %853 = vmatmul.msk.f32.gmra.mxu2 %vm43_vm0, %v1165_v17 }
 0xce4   : > { %v603_v31 = vpop.f32.mrf.mxu2 }
 0xce5   : > { %v604_v33 = vadd.f32 %v1151_v13, %v603_v31 }
 0xcec   : > { %v606_v32 = vpop.f32.mrf.mxu2 }
 0xced   : > { %v607_v34 = vadd.f32 %v1153_v14, %v606_v32 }
 0xcef   : > { %999 = vtanh.f32 %v607_v34 }
 0xcf0   : > { %1001 = vtanh.f32 %v604_v33 }
 0xcf5   : > { %v1000_v35 = vpop.eup %999 }
 0xcf6   : > { %625 = vmatpush.msra.mxu3 %v1000_v35  ;;  %v1002_v36 = vpop.eup %1001 }
 0xcf8   : > { %626 = vmatpush.msra.mxu3 %v1002_v36 }
 0xcf9   : > { %854 = vmatmul.msk.f32.vlgmr.msra.gmra.mxu3 %vm43_vm0, %v1160_v16 }
 0xd01   : > { %855 = vmatmul.msk.f32.gmra.mxu3 %vm43_vm0, %v1165_v17 }
 0xd7c   : > { %v628_v37 = vpop.f32.mrf.mxu3 }
 0xd7d   : > { %v629_v39 = vadd.f32 %v1151_v13, %v628_v37 }
 0xd84   : > { %v631_v38 = vpop.f32.mrf.mxu3 }
 0xd85   : > { %v632_v40 = vadd.f32 %v1153_v14, %v631_v38 }
 0xd87   : > { %1003 = vtanh.f32 %v632_v40 }
 0xd88   : > { %1005 = vtanh.f32 %v629_v39 }
 0xd8d   : > { %v1004_v41 = vpop.eup %1003 }
 0xd8e   : > { %650 = vmatpush.msrb.mxu0 %v1004_v41  ;;  %v1006_v42 = vpop.eup %1005 }
 0xd90   : > { %651 = vmatpush.msrb.mxu0 %v1006_v42 }
 0xd91   : > { %856 = vmatmul.msk.f32.vlgmr.msrb.gmra.mxu0 %vm43_vm0, %v1160_v16 }
 0xd99   : > { %857 = vmatmul.msk.f32.gmra.mxu0 %vm43_vm0, %v1165_v17 }
 0xe0e   : > { %v653_v43 = vpop.f32.mrf.mxu0 }
 0xe0f   : > { %v654_v45 = vadd.f32 %v1151_v13, %v653_v43 }
 0xe16   : > { %v656_v44 = vpop.f32.mrf.mxu0 }
 0xe17   : > { %v657_v46 = vadd.f32 %v1153_v14, %v656_v44 }
 0xe19   : > { %1007 = vtanh.f32 %v657_v46 }
 0xe1a   : > { %1009 = vtanh.f32 %v654_v45 }
 0xe1f   : > { %v1008_v47 = vpop.eup %1007 }
 0xe20   : > { %675 = vmatpush.msrb.mxu1 %v1008_v47  ;;  %v1010_v48 = vpop.eup %1009 }
 0xe22   : > { %676 = vmatpush.msrb.mxu1 %v1010_v48 }
 0xe23   : > { %858 = vmatmul.msk.f32.vlgmr.msrb.gmra.mxu1 %vm43_vm0, %v1160_v16 }
 0xe2b   : > { %859 = vmatmul.msk.f32.gmra.mxu1 %vm43_vm0, %v1165_v17 }
 0xea0   : > { %v678_v49 = vpop.f32.mrf.mxu1 }
 0xea1   : > { %v679_v51 = vadd.f32 %v1151_v13, %v678_v49 }
 0xea8   : > { %v681_v50 = vpop.f32.mrf.mxu1 }
 0xea9   : > { %v682_v52 = vadd.f32 %v1153_v14, %v681_v50 }
 0xeab   : > { %1011 = vtanh.f32 %v682_v52 }
 0xeac   : > { %1013 = vtanh.f32 %v679_v51 }
 0xeb1   : > { %v1012_v53 = vpop.eup %1011 }
 0xeb2   : > { %700 = vmatpush.msrb.mxu2 %v1012_v53  ;;  %v1014_v54 = vpop.eup %1013 }
 0xeb4   : > { %701 = vmatpush.msrb.mxu2 %v1014_v54 }
 0xeb5   : > { %860 = vmatmul.msk.f32.vlgmr.msrb.gmra.mxu2 %vm43_vm0, %v1160_v16 }
 0xebd   : > { %861 = vmatmul.msk.f32.gmra.mxu2 %vm43_vm0, %v1165_v17 }
 0xf38   : > { %v703_v55 = vpop.f32.mrf.mxu2 }
 0xf39   : > { %v704_v57 = vadd.f32 %v1151_v13, %v703_v55 }
 0xf40   : > { %v706_v56 = vpop.f32.mrf.mxu2 }
 0xf41   : > { %v707_v58 = vadd.f32 %v1153_v14, %v706_v56 }
 0xf43   : > { %1015 = vtanh.f32 %v707_v58 }
 0xf44   : > { %1017 = vtanh.f32 %v704_v57 }
 0xf49   : > { %v1016_v59 = vpop.eup %1015 }
 0xf4a   : > { %725 = vmatpush.msrb.mxu3 %v1016_v59  ;;  %v1018_v60 = vpop.eup %1017 }
 0xf4c   : > { %726 = vmatpush.msrb.mxu3 %v1018_v60 }
 0xf4d   : > { %862 = vmatmul.msk.f32.vlgmr.msrb.gmra.mxu3 %vm43_vm0, %v1160_v16 }
 0xf55   : > { %863 = vmatmul.msk.f32.gmra.mxu3 %vm43_vm0, %v1165_v17 }
 0xfd0   : > { %v728_v61 = vpop.f32.mrf.mxu3 }
 0xfd1   : > { %v729_v62 = vadd.f32 %v1151_v13, %v728_v61 }
 0xfd3   : > { %1019 = vtanh.f32 %v729_v62 }
 0xfd8   : > { %v731_v63 = vpop.f32.mrf.mxu3 }
 0xfd9   : > { %v732_v0 = vadd.f32 %v1153_v14, %v731_v63  ;;  %v1020_v1 = vpop.eup %1019  }
 0xfda   : > { %v736_v2 = vsub.f32 %v1018_v60, %v1020_v1  ;;  %v1371_v23 = vmov %v1020_v1 }
 0xfdb   : > { %1021 = vtanh.f32 %v732_v0 }
 0xfdc   : > { %v738_v6 = vmul.f32 %v736_v2, %v736_v2 }
 0xfde   : > { %v740_v8 = vsel %vm112_vm1, %v738_v6, 0.0 }
 0xfe1   : > { %v1022_v3 = vpop.eup %1021  }
 0xfe2   : > { %v737_v5 = vsub.f32 %v1016_v59, %v1022_v3  ;;  %v1370_v25 = vmov %v1022_v3 }
 0xfe4   : > { %v739_v7 = vmul.f32 %v737_v5, %v737_v5 }
 0xfe6   : > { %v741_v9 = vsel %vm112_vm1, %v739_v7, 0.0 }
 0xfe7   : > { %v742_v10 = vadd.f32 %v741_v9, %v740_v8 }
 0xfe9   : > { %743 = vadd.xlane.f32.xlu0 %v742_v10 }
0x105c   : > { %v744_v11 = vpop.xlane.xlu0 %743 }
0x105d   : > { %v745_v12 = vrot.slane %v744_v11, 4 }
0x105f   : > { %v746_v15 = vadd.f32 %v745_v12, %v744_v11 }
0x1061   : > { %v747_v18 = vrot.slane %v746_v15, 2 }
0x1063   : > { %v748_v19 = vadd.f32 %v747_v18, %v746_v15 }
0x1065   : > { %v749_v20 = vrot.slane %v748_v19, 1 }
0x1067   : > { %v750_v21 = vadd.f32 %v749_v20, %v748_v19 }
0x1069   : > { %870 = vpush %v750_v21 }
0x109a   : > { %s871_s12 = spop %870 }
0x109b   : > { %p131_p2 = scmp.ge.f32.partialorder %s871_s12, 1e-08 }
0x109d   : > { %p132_p3 = pnand %p131_p2, %p130_p1 }
0x109e   :  { %v1372_v39 = vmov (%p132_p3), %v1022_v3  ;;  %v1373_v40 = vmov (%p132_p3), %v1020_v1 }
0x109f   :  { %135 = sbr.rel (!%p132_p3) target bundleno = 490 (0x1ea), region = 51 }
0x10a4 PF:  { %1023 = vset.pattern.permute.xlu0 %v1090_v4  ;;  %v753_v22 = vld [vmem:[%s1365_s4] sm:$0xff]  ;;  %v754_v13 = vld [vmem:[%s1365_s4 + $0x8] sm:$0xff]  ;;  %s776_s17 = sld [smem:[#allocation2]]  ;;  %s1091_s18 = smov [#allocation3]   ;;  %vm779_vm2 = vcmask 57344   ;;  %v1088_v40 = vphi %v1369_v40, %v1373_v40   ;;  %v1084_v39 = vphi %v1368_v39, %v1372_v39  }
0x10a5   :  { %757 = vperm.xlu0 %1023, %v753_v22   ;;  %s786_s19 = sshll.u32 %s1091_s18, 4  ;;  %s788_s21 = sshll.u32 %s1367_s6, 4  ;;  %s787_s19 = int_to_ptr.vmem [resolvable:$true] %s786_s19  ;;  %s789_s21 = int_to_ptr.hbm [resolvable:$true] %s788_s21 }
0x10aa   :  { %v777_v31 = vstv %s776_s17 }
0x10ad   :  { %762 = vperm.xlu0 %1023, %v754_v13  }
0x1117   :  { %v758_v14 = vpop.permute.xlu0 %757 }
0x1118   :  { %v765_v16 = vmul.f32 %v1088_v40, %v758_v14 }
0x111a   :  { %v767_v24 = vsel %vm112_vm1, %v765_v16, 0.0 }
0x111f   :  { %v763_v17 = vpop.permute.xlu0 %762 }
0x1120   :  { %v766_v23 = vmul.f32 %v1084_v39, %v763_v17 }
0x1122   :  { %v768_v25 = vsel %vm112_vm1, %v766_v23, 0.0 }
0x1123   :  { %v769_v26 = vadd.f32 %v768_v25, %v767_v24 }
0x1125   :  { %v770_v4 = vrot.slane %v769_v26, 4 }
0x1127   :  { %v771_v27 = vadd.f32 %v770_v4, %v769_v26 }
0x1129   :  { %v772_v28 = vrot.slane %v771_v27, 2 }
0x112b   :  { %v773_v29 = vadd.f32 %v772_v28, %v771_v27 }
0x112d   :  { %v774_v30 = vrot.slane %v773_v29, 1 }
0x112f   :  { %v775_v32 = vadd.f32 %v774_v30, %v773_v29 }
0x1131   :  { %v778_v33 = vadd.f32 %v777_v31, %v775_v32 }
0x1133   :  { %780 = vst.msk [vmem:[#allocation3] sm:$0x1] %vm779_vm2, %v778_v33 }
0x1134   :  { %791 = dma.vmem_to_hbm [thread:$0]  %s787_s19, 16, %s789_s21, [#allocation4]  }
0x1135   :  { %1068 = dma.done.wait [#allocation4], 16  }
0x1136   :  { %1069 = vsyncadd [#allocation4], 4294967280 }
0x1137   :  { %796 = vsyncpa [#allocation4], 1 }

</bundles_post_ra>
